<compile_context>
chip_gen: v7x
topology: tpu7x:2x2x1
jax: 0.10.0
libtpu: 0.0.40
codegen_flags: <defaults>
</compile_context>

<pallas_src>
import jax
import jax.numpy as jnp
from jax.experimental import pallas as pl
from jax.experimental.pallas import tpu as pltpu

_LANE = 128


def _add_pos_kernel(x_ref, pos_ref, o_ref):
    # x_ref: (TB, TF), pos_ref: (1, TF) -> broadcast add over rows.
    # Kernel is DMA-bound; the VPU add (and the row broadcast) is fully
    # hidden under the HBM read/write streams.
    o_ref[...] = x_ref[...] + pos_ref[...]


def _vmem_capacity_bytes():
    """Trace-time HW query; conservative (v7x, 64 MiB/TC) fallback."""
    try:
        cap = getattr(pltpu.get_tpu_info(), "vmem_capacity_bytes", None)
        if cap:
            return int(cap)
    except Exception:
        pass
    return 64 << 20


def _sublane_multiple(dtype):
    # Sub-32-bit dtypes pack along sublanes: 8 rows (f32), 16 (bf16), 32 (i8/fp8).
    itemsize = jnp.dtype(dtype).itemsize
    return max(8, 32 // max(1, itemsize))


def _choose_tiles(B, F, dtype, target_block_bytes):
    """Pick (tb, tf) block dims for the (B, F) slab.

    - tf is the full F when a (mult, F) block fits the byte budget, otherwise
      a multiple-of-128 chunk sized to the budget.
    - tb is sized to the budget and rounded to the dtype's sublane multiple.
    - If everything fits in a single grid step, split (rows first, else lanes)
      so v7x's two TensorCores both get work.
    """
    itemsize = jnp.dtype(dtype).itemsize
    mult = _sublane_multiple(dtype)

    # --- lane (F) tile ---
    if mult * F * itemsize <= target_block_bytes:
        tf = F
    else:
        tf = (target_block_bytes // (mult * itemsize)) // _LANE * _LANE
        tf = max(_LANE, min(tf, F))

    # --- sublane (B) tile ---
    rows_budget = max(1, target_block_bytes // max(1, tf * itemsize))
    if rows_budget >= B:
        tb = B
    else:
        tb = min(B, max(mult, (rows_budget // mult) * mult))

    # --- guarantee >= 2 grid steps when possible (v7x has 2 TensorCores) ---
    if pl.cdiv(B, tb) * pl.cdiv(F, tf) < 2:
        if B >= 2 * mult:
            half = (B + 1) // 2
            tb = ((half + mult - 1) // mult) * mult     # ~half, sublane-rounded
        elif F >= 2 * _LANE:
            half = (F + 1) // 2
            tf = ((half + _LANE - 1) // _LANE) * _LANE  # ~half, lane-rounded
        # else: array is tiny; a single step is fine.

    return tb, tf


def learned_positional_encoding(x, pos_embedding):
    """x: (B, L, D), pos_embedding: (1, max_len, D) or (max_len, D), L <= max_len."""
    B, L, D = x.shape
    pos = pos_embedding.reshape(pos_embedding.shape[-2], pos_embedding.shape[-1])
    # PyTorch `x + self.pos_embedding` requires L == max_len; the slice also
    # supports the common shorter-sequence variant without changing semantics
    # for L == max_len.
    pos = pos[:L].astype(x.dtype)     # same-dtype vadd inside the kernel

    F = L * D
    x2d = x.reshape(B, F)             # lane-dense slab: last dim F = L*D >> D
    pos2d = pos.reshape(1, F)         # tiny, stays VMEM-resident per F-block

    itemsize = jnp.dtype(x.dtype).itemsize
    vmem_cap = _vmem_capacity_bytes()
    # ~4 block buffers (2x in + 2x out) must sit comfortably inside VMEM.
    target_block_bytes = int(min(8 << 20, max(2 << 20, vmem_cap // 8)))

    tb, tf = _choose_tiles(B, F, x.dtype, target_block_bytes)
    grid = (pl.cdiv(B, tb), pl.cdiv(F, tf))

    block_bytes = tb * tf * itemsize
    # 2x in + 2x out double buffers + resident pos + compiler scratch headroom,
    # clamped under physical VMEM (v7x: 64 MiB) and never below the default.
    vmem_limit = 4 * block_bytes + 2 * tf * itemsize + (8 << 20)
    vmem_limit = int(max(16 << 20, min(vmem_limit, vmem_cap - (16 << 20))))

    y2d = pl.pallas_call(
        _add_pos_kernel,
        out_shape=jax.ShapeDtypeStruct((B, F), x.dtype),
        grid_spec=pltpu.PrefetchScalarGridSpec(
            num_scalar_prefetch=0,
            grid=grid,
            in_specs=[
                pl.BlockSpec((tb, tf), lambda i, j: (i, j)),
                pl.BlockSpec((1, tf), lambda i, j: (0, j)),  # constant row: resident
            ],
            out_specs=pl.BlockSpec((tb, tf), lambda i, j: (i, j)),
        ),
        compiler_params=pltpu.CompilerParams(
            dimension_semantics=("parallel", "parallel"),
            vmem_limit_bytes=vmem_limit,
        ),
        # No input_output_aliases: without caller-side donation the alias
        # triggers a defensive full copy of x (strictly worse than no alias).
    )(x2d, pos2d)
    return y2d.reshape(B, L, D)


if __name__ == "__main__":
    d_model = 32
    max_len = 25

    key = jax.random.PRNGKey(0)
    kx, kp, kx2 = jax.random.split(key, 3)

    # nn.Parameter(torch.zeros(1, max_len, d_model)) — zero-initialized in
    # PyTorch; use deterministic random values so the add is non-trivial.
    pos_embedding = jax.random.normal(kp, (1, max_len, d_model),
                                      dtype=jnp.float32) * 0.02

    # Toy shape (matches the module defaults): small-batch path (F split).
    x = jax.random.normal(kx, (2, max_len, d_model), dtype=jnp.float32)
    y = jax.block_until_ready(learned_positional_encoding(x, pos_embedding))
    assert y.shape == x.shape
    assert jnp.allclose(y, x + pos_embedding, atol=1e-6), "mismatch (B=2)"

    # Larger batch: exercises the multi-row-block grid path.
    x_big = jax.random.normal(kx2, (32, max_len, d_model), dtype=jnp.float32)
    y_big = jax.block_until_ready(learned_positional_encoding(x_big, pos_embedding))
    assert y_big.shape == x_big.shape
    assert jnp.allclose(y_big, x_big + pos_embedding, atol=1e-6), "mismatch (B=32)"

    print("KERNEL_OK")
</pallas_src>

<mosaic_0001>
module attributes {stable_mosaic.version = 11 : i64} {
  func.func @_add_pos_kernel(%arg0: i32, %arg1: i32, %arg2: memref<2x512xf32, #tpu.memory_space<vmem>>, %arg3: memref<1x512xf32, #tpu.memory_space<vmem>>, %arg4: memref<2x512xf32, #tpu.memory_space<vmem>>) attributes {dimension_semantics = [#tpu.dimension_semantics<parallel>, #tpu.dimension_semantics<parallel>], iteration_bounds = array<i64: 1, 2>, scalar_prefetch = 0 : i64, scratch_operands = 0 : i64, tpu.core_type = #tpu.core_type<tc>, window_params = [{transform_indices = @transform_0, window_bounds = array<i64: 2, 512>}, {transform_indices = @transform_1, window_bounds = array<i64: 1, 512>}, {transform_indices = @transform_2, window_bounds = array<i64: 2, 512>}]} {
    %c0 = arith.constant 0 : index
    %c0_0 = arith.constant 0 : index
    %0 = vector.load %arg2[%c0, %c0_0] : memref<2x512xf32, #tpu.memory_space<vmem>>, vector<2x512xf32>
    %c0_1 = arith.constant 0 : index
    %c0_2 = arith.constant 0 : index
    %1 = vector.load %arg3[%c0_1, %c0_2] : memref<1x512xf32, #tpu.memory_space<vmem>>, vector<1x512xf32>
    %2 = vector.broadcast %1 : vector<1x512xf32> to vector<2x512xf32>
    %3 = arith.addf %0, %2 : vector<2x512xf32>
    %c0_3 = arith.constant 0 : index
    %c0_4 = arith.constant 0 : index
    %4 = vector.load %arg4[%c0_3, %c0_4] : memref<2x512xf32, #tpu.memory_space<vmem>>, vector<2x512xf32>
    tpu.vector_store %arg4[%c0_3, %c0_4], %3 {strides = array<i32>} : memref<2x512xf32, #tpu.memory_space<vmem>>, vector<2x512xf32>,
    return
  }
  func.func @transform_0(%arg0: i32, %arg1: i32) -> (i32, i32) {
    %c0_i32 = arith.constant 0 : i32
    return %arg0, %arg1 : i32, i32
  }
  func.func @transform_1(%arg0: i32, %arg1: i32) -> (i32, i32) {
    %c0_i32 = arith.constant 0 : i32
    %c0_i32_0 = arith.constant 0 : i32
    return %c0_i32, %arg1 : i32, i32
  }
  func.func @transform_2(%arg0: i32, %arg1: i32) -> (i32, i32) {
    %c0_i32 = arith.constant 0 : i32
    return %arg0, %arg1 : i32, i32
  }
}

</mosaic_0001>

<bundles_post_ra>
// kernel: tpu_custom_call.1
= control target key start
LH: loop header
LB: loop body
LE: loop exit
PB: predicated region body
PF: predicated region fallthrough
CT: control target
= control target key end

     0   :  { %7 = vsyncpa [#allocation3], 0  ;;  %s886_s0 = inlined_call_operand.hbm [shape: f32[2,800], index: 0, kind: input, shape index: {}]   ;;  %s887_s1 = inlined_call_operand.hbm [shape: f32[1,800], index: 1, kind: input, shape index: {}]   ;;  %s888_s2 = inlined_call_operand.hbm [shape: f32[2,800], index: 2, kind: output, shape index: {}]  }
   0x1   :  { %9 = vsyncpa [#allocation3 + $0x1], 0 }
   0x2   :  { %10 = vsyncpa [#allocation6], 0 }
   0x3   :  { %12 = vsyncpa [#allocation6 + $0x1], 0 }
   0x4   :  { %13 = vsyncpa [#allocation4], 0 }
   0x5   :  { %15 = vsyncpa [#allocation4 + $0x1], 0  ;;  %s663_s9 = smov 0   ;;  %s665_s10 = smov 0  }
   0x6   :  { %s667_s11 = smov 0   ;;  %s669_s12 = smov 0  }
   0x7   :  { %s671_s13 = smov 0   ;;  %s673_s14 = smov 0  }
   0x8 LB: > { %s411_s15 = sadd.s32 4294967295, %s642_s14   ;;  %s412_s16 = sadd.s32 4294967294, %s642_s14   ;;  %s642_s14 = sphi %s673_s14, %s21_s14   ;;  %s638_s13 = sphi %s671_s13, %s905_s13   ;;  %s634_s12 = sphi %s669_s12, %s904_s12   ;;  %s630_s11 = sphi %s667_s11, %s903_s11   ;;  %s626_s10 = sphi %s665_s10, %s902_s10   ;;  %s622_s9 = sphi %s663_s9, %s901_s9  }
   0x9   : > { %s30_s17 = sadd.s32 1, %s638_s13  ;;  %s42_s18 = sadd.s32 1, %s630_s11 }
   0xa   : > { %p31_p0 = scmp.ge.s32.totalorder %s30_s17, 2  ;;  %p49_p1 = scmp.ne.s32.totalorder %s630_s11, %s626_s10 }
   0xb   : > { %p50_p2 = scmp.eq.s32.totalorder %s642_s14, 0  ;;  %p55_p3 = scmp.ne.s32.totalorder %s626_s10, %s622_s9 }
   0xc   : > { %s907_s17 = smov (%p31_p0, %s30_s17), 0  ;;  %p56_p5 = scmp.eq.s32.totalorder %s411_s15, 0 }
   0xd   : > { %p704_p4 = por %p50_p2, %p49_p1  ;;  %s38_s20 = ssub.s32 %s638_s13, %s907_s17 }
   0xe   : > { %p107_p6 = scmp.eq.s32.totalorder %s411_s15, 1  ;;  %p40_p7 = scmp.eq.s32.totalorder %s38_s20, 0 }
   0xf   : > { %s892_s19 = scalar_select %p704_p4, 1, 0 }
  0x10   : > { %p710_p8 = por %p56_p5, %p55_p3  ;;  %p714_p9 = por %p107_p6, %p49_p1 }
  0x11   : > { %p113_p10 = scmp.eq.s32.totalorder %s412_s16, 1  ;;  %p889_p12 = scmp.ge.s32.totalorder %s642_s14, 2 }
  0x12   : > { %s893_s21 = scalar_select %p710_p8, 1, 0 }
  0x13   : > { %s894_s22 = scalar_select %p714_p9, 1, 0 }
  0x14   : > { %s719_s23 = scalar_select %p40_p7, %s630_s11, %s42_s18  }
  0x15   : > { %p721_p11 = por %p113_p10, %p55_p3  ;;  %129 = sbr.rel (%p889_p12) target bundleno = 98 (0x62), region = 16 }
  0x17   : > { %s895_s24 = scalar_select %p721_p11, 1, 0 }
  0x1c   : > { %132 = sbr.rel (!%p704_p4) target bundleno = 62 (0x3e), region = 20  ;;  %s133_s25 = sand.u32 (%p704_p4), 1, %s630_s11  }
  0x1d   : > { %s416_s26 = sshll.u32 (%p704_p4), %s638_s13, 2  ;;  %s415_s27 = sshll.u32 (%p704_p4), %s133_s25, 3 }
  0x1e   : > { %s139_s28 = ssub.s32 (%p704_p4), 7, %s416_s26  ;;  %s735_s3 = scalar_lea.sflag (%p704_p4), [#allocation3], %s133_s25 }
  0x1f   : > { %p140_p13 = scmp.lt.s32.totalorder (%p704_p4), %s139_s28, 4  ;;  %s137_s4 = scalar_lea.vmem (%p704_p4), [#allocation2], %s415_s27 }
  0x23   : > { %s909_s28 = smov (!%p140_p13, %s139_s28), 4 }
  0x24   : > { %s732_s29 = sshll.u32 %s909_s28, 5 }
  0x25   : > { %s144_s30 = ssub.s32 128, %s732_s29 }
  0x26   : > { %145 = vsyncadd %s735_s3, %s144_s30  ;;  %p418_p0 = scmp.ne.s32.totalorder %s732_s29, 0  ;;  %s440_s5 = sshll.u32 %s638_s13, 7 }
  0x27   : > { %s743_s8 = scalar_lea.hbm %s886_s0, %s440_s5  ;;  %s153_s15 = sshll.u32 %s137_s4, 4  ;;  %s154_s15 = int_to_ptr.vmem [resolvable:$true] %s153_s15 }
  0x28   : > { %s500_s16 = scalar_lea.hbm %s743_s8, %s732_s29  ;;  %s504_s25 = scalar_lea.hbm %s886_s0, 224 }
  0x29   : > { %p501_p1 = scmp.ne.s32.totalorder %s743_s8, %s500_s16  ;;  %p505_p5 = scmp.lt.u32.totalorder %s743_s8, %s886_s0 }
  0x2a   : > { %p506_p6 = scmp.lt.u32.totalorder %s504_s25, %s500_s16  ;;  %p508_p10 = scmp.lt.u32.totalorder %s500_s16, %s743_s8 }
  0x2b   : > { %p502_p2 = pnand %p501_p1, %p418_p0 }
  0x2c   : > { %p507_p7 = por %p506_p6, %p505_p5 }
  0x2d   : > { %p503_p3 = pneg %p502_p2 }
  0x2e   : > { %p509_p13 = por %p508_p10, %p507_p7 }
  0x30   : > { %p510_p12 = pnand %p509_p13, %p503_p3 }
  0x32   : > { %513 = shalt.err (!%p510_p12)
}
  0x33   : > { %s514_s28 = scalar_lea.vmem %s154_s15, %s732_s29  ;;  %s644_s30 = smov [#allocation2]  }
  0x34   : > { %p515_p11 = scmp.ne.s32.totalorder %s154_s15, %s514_s28  ;;  %s518_s4 = sshll.u32 %s644_s30, 4  ;;  %s519_s4 = int_to_ptr.vmem [resolvable:$false] %s518_s4 }
  0x35   : > { %s520_s5 = scalar_lea.vmem %s519_s4, 256  ;;  %p521_p9 = scmp.lt.s32.totalorder %s154_s15, %s519_s4 }
  0x36   : > { %p516_p1 = pnand %p515_p11, %p418_p0  ;;  %p522_p8 = scmp.lt.s32.totalorder %s520_s5, %s514_s28 }
  0x38   : > { %p517_p2 = pneg %p516_p1  ;;  %p523_p4 = por %p522_p8, %p521_p9 }
  0x3a   : > { %p524_p5 = pnand %p523_p4, %p517_p2 }
  0x3c   : > { %527 = shalt.err (!%p524_p5)
}
  0x3d   : > { %156 = dma.hbm_to_vmem [thread:$0]  (%p418_p0), %s743_s8, %s732_s29, %s154_s15, %s735_s3  }
  0x3e PF: > { %p896_p12 = scmp.ne.s32.totalorder %s892_s19, 0 }
  0x3f   : > { %s160_s6 = sand.u32 (%p896_p12), 1, %s630_s11   ;;  %s423_s7 = sshll.u32 (%p896_p12), %s638_s13, 2 }
  0x40   : > { %159 = sbr.rel (!%p896_p12) target bundleno = 98 (0x62), region = 24  ;;  %s422_s16 = sshll.u32 (%p896_p12), %s160_s6, 2 }
  0x41   : > { %s166_s18 = ssub.s32 (%p896_p12), 7, %s423_s7  ;;  %s773_s26 = scalar_lea.sflag (%p896_p12), [#allocation6], %s160_s6 }
  0x42   : > { %p167_p11 = scmp.lt.s32.totalorder (%p896_p12), %s166_s18, 4  ;;  %s164_s29 = scalar_lea.vmem (%p896_p12), [#allocation5], %s422_s16 }
  0x47   : > { %s911_s18 = smov (!%p167_p11, %s166_s18), 4 }
  0x48   : > { %s770_s20 = sshll.u32 %s911_s18, 4 }
  0x49   : > { %s171_s25 = ssub.s32 64, %s770_s20 }
  0x4a   : > { %172 = vsyncadd %s773_s26, %s171_s25  ;;  %p425_p4 = scmp.ne.s32.totalorder %s770_s20, 0  ;;  %s441_s19 = sshll.u32 %s638_s13, 6 }
  0x4b   : > { %s781_s15 = scalar_lea.hbm %s887_s1, %s441_s19  ;;  %s177_s27 = sshll.u32 %s164_s29, 4  ;;  %s178_s27 = int_to_ptr.vmem [resolvable:$true] %s177_s27 }
  0x4c   : > { %s528_s28 = scalar_lea.hbm %s781_s15, %s770_s20  ;;  %s532_s5 = scalar_lea.hbm %s887_s1, 112 }
  0x4d   : > { %p529_p8 = scmp.ne.s32.totalorder %s781_s15, %s528_s28  ;;  %p533_p3 = scmp.lt.u32.totalorder %s781_s15, %s887_s1 }
  0x4e   : > { %p534_p6 = scmp.lt.u32.totalorder %s532_s5, %s528_s28  ;;  %p536_p10 = scmp.lt.u32.totalorder %s528_s28, %s781_s15 }
  0x4f   : > { %p530_p9 = pnand %p529_p8, %p425_p4 }
  0x50   : > { %p535_p7 = por %p534_p6, %p533_p3 }
  0x51   : > { %p531_p0 = pneg %p530_p9 }
  0x52   : > { %p537_p13 = por %p536_p10, %p535_p7 }
  0x54   : > { %p538_p1 = pnand %p537_p13, %p531_p0 }
  0x56   : > { %541 = shalt.err (!%p538_p1)
}
  0x57   : > { %s542_s16 = scalar_lea.vmem %s178_s27, %s770_s20  ;;  %s645_s18 = smov [#allocation5]  }
  0x58   : > { %p543_p2 = scmp.ne.s32.totalorder %s178_s27, %s542_s16  ;;  %s546_s25 = sshll.u32 %s645_s18, 4  ;;  %s547_s25 = int_to_ptr.vmem [resolvable:$false] %s546_s25 }
  0x59   : > { %s548_s29 = scalar_lea.vmem %s547_s25, 128  ;;  %p549_p11 = scmp.lt.s32.totalorder %s178_s27, %s547_s25 }
  0x5a   : > { %p544_p5 = pnand %p543_p2, %p425_p4  ;;  %p550_p8 = scmp.lt.s32.totalorder %s548_s29, %s542_s16 }
  0x5c   : > { %p545_p12 = pneg %p544_p5  ;;  %p551_p9 = por %p550_p8, %p549_p11 }
  0x5e   : > { %p552_p3 = pnand %p551_p9, %p545_p12 }
  0x60   : > { %555 = shalt.err (!%p552_p3)
}
  0x61   : > { %180 = dma.hbm_to_vmem [thread:$0]  (%p425_p4), %s781_s15, %s770_s20, %s178_s27, %s773_s26  }
  0x62 PF: > { %p427_p0 = scmp.ge.s32.totalorder %s642_s14, 1  ;;  %p182_p6 = scmp.lt.s32.totalorder %s642_s14, 3 }
  0x64   : > { %p183_p7 = pnand %p427_p0, %p182_p6 }
  0x65   : > { %s807_s19 = sand.u32 (!%p183_p7), 1, %s626_s10   ;;  %p897_p4 = scmp.ne.s32.totalorder (!%p183_p7), %s893_s21, 0 }
  0x66   : > { %186 = sbr.rel (%p183_p7) target bundleno = 157 (0x9d), region = 28  ;;  %s428_s3 = sshll.u32 (!%p183_p7), %s807_s19, 3 }
  0x67   : > { %s189_s8 = scalar_lea.sflag (!%p183_p7), [#allocation3], %s807_s19  ;;  %s192_s28 = scalar_lea.vmem (!%p183_p7), [#allocation2], %s428_s3 }
  0x6d   : > { %609 = dma.done.wait (%p897_p4), %s189_s8, 128  }
  0x6e   : > { %611 = vsyncadd (%p897_p4), %s189_s8, 4294967168  ;;  %s429_s20 = sshll.u32 %s807_s19, 2  ;;  %s198_s26 = scalar_lea.sflag [#allocation6], %s807_s19 }
  0x6f   : > { %s201_s15 = scalar_lea.vmem [#allocation5], %s429_s20 }
  0x70   : > { %613 = dma.done.wait (%p897_p4), %s198_s26, 64  }
  0x71   : > { %615 = vsyncadd (%p897_p4), %s198_s26, 4294967232  ;;  %v245_v0 = vlaneseq  ;;  %v646_v1 = vmov 1983009808   ;;  %v243_v9 = vld [vmem:[%s201_s15] sm:$0xf]  ;;  %v242_v19 = vld [vmem:[%s192_s28] sm:$0xff] }
  0x72   : > { %v264_v2 = vunpack.c.l.s4 %v646_v1  ;;  %s226_s21 = scalar_lea.vmem [#allocation7], %s428_s3  ;;  %s282_s27 = scalar_lea.sflag [#allocation4], %s807_s19 }
  0x73   : > { %v246_v3 = vshrl.u32 %v245_v0, 7  ;;  %p898_p10 = scmp.ne.s32.totalorder %s894_s22, 0 }
  0x74   : > { %v265_v4 = vunpack.c.0.s8 %v264_v2  ;;  %s432_s30 = sshll.u32 (%p898_p10), %s634_s12, 2 }
  0x75   : > { %v247_v5 = vsub.s32 0, %v246_v3  ;;  %v251_v6 = vsub.s32 1, %v246_v3  ;;  %v255_v7 = vsub.s32 2, %v246_v3  ;;  %v259_v8 = vsub.s32 3, %v246_v3  ;;  %s290_s4 = ssub.s32 (%p898_p10), 7, %s432_s30 }
  0x76   : > { %v268_v10 = vsub.s32 %v265_v4, %v246_v3  ;;  %p291_p13 = scmp.lt.s32.totalorder (%p898_p10), %s290_s4, 4 }
  0x77   : > { %v248_v11 = vrot.slane %v243_v9, %v247_v5  ;;  %v252_v12 = vrot.slane %v243_v9, %v251_v6  ;;  %v256_v13 = vrot.slane %v243_v9, %v255_v7  ;;  %v260_v14 = vrot.slane %v243_v9, %v259_v8 }
  0x79   : > { %v261_v15 = vcombine.low %v248_v11, %v252_v12  ;;  %v262_v16 = vcombine.low %v256_v13, %v260_v14 }
  0x7b   : > { %v269_v17 = vrot.slane %v261_v15, %v268_v10  ;;  %v276_v18 = vrot.slane %v262_v16, %v268_v10  ;;  %288 = sbr.rel (!%p898_p10) target bundleno = 157 (0x9d), region = 40 }
  0x7d   : > { %v277_v20 = vcombine.low %v269_v17, %v276_v18 }
  0x7f   : > { %v279_v21 = vadd.f32 %v277_v20, %v242_v19 }
  0x81   : > { %280 = vst [vmem:[%s226_s21] sm:$0xff] %v279_v21 }
  0x82   : > { %s913_s4 = smov (!%p291_p13, %s290_s4), 4 }
  0x83   : > { %s829_s5 = sshll.u32 %s913_s4, 5 }
  0x84   : > { %s295_s6 = ssub.s32 128, %s829_s5 }
  0x85   : > { %296 = vsyncadd %s282_s27, %s295_s6  ;;  %p434_p1 = scmp.ne.s32.totalorder %s829_s5, 0  ;;  %s442_s7 = sshll.u32 %s634_s12, 7 }
  0x86   : > { %s839_s18 = scalar_lea.hbm %s888_s2, %s442_s7  ;;  %s304_s25 = sshll.u32 %s226_s21, 4  ;;  %s305_s25 = int_to_ptr.vmem [resolvable:$true] %s304_s25 }
  0x87   : > { %s556_s29 = scalar_lea.vmem %s305_s25, %s829_s5  ;;  %s647_s3 = smov [#allocation7]  }
  0x88   : > { %p557_p2 = scmp.ne.s32.totalorder %s305_s25, %s556_s29  ;;  %s560_s8 = sshll.u32 %s647_s3, 4  ;;  %s561_s8 = int_to_ptr.vmem [resolvable:$false] %s560_s8 }
  0x89   : > { %s562_s28 = scalar_lea.vmem %s561_s8, 256  ;;  %p563_p11 = scmp.lt.s32.totalorder %s305_s25, %s561_s8 }
  0x8a   : > { %p558_p5 = pnand %p557_p2, %p434_p1  ;;  %p564_p8 = scmp.lt.s32.totalorder %s562_s28, %s556_s29 }
  0x8c   : > { %p559_p12 = pneg %p558_p5  ;;  %p565_p9 = por %p564_p8, %p563_p11 }
  0x8e   : > { %p566_p3 = pnand %p565_p9, %p559_p12 }
  0x90   : > { %569 = shalt.err (!%p566_p3)
}
  0x91   : > { %s570_s12 = scalar_lea.hbm %s839_s18, %s829_s5  ;;  %s574_s15 = scalar_lea.hbm %s888_s2, 224 }
  0x92   : > { %p571_p0 = scmp.ne.s32.totalorder %s839_s18, %s570_s12  ;;  %p575_p4 = scmp.lt.u32.totalorder %s839_s18, %s888_s2 }
  0x93   : > { %p576_p10 = scmp.lt.u32.totalorder %s574_s15, %s570_s12  ;;  %p578_p2 = scmp.lt.u32.totalorder %s570_s12, %s839_s18 }
  0x94   : > { %p572_p6 = pnand %p571_p0, %p434_p1 }
  0x95   : > { %p577_p13 = por %p576_p10, %p575_p4 }
  0x96   : > { %p573_p7 = pneg %p572_p6 }
  0x97   : > { %p579_p5 = por %p578_p2, %p577_p13 }
  0x99   : > { %p580_p12 = pnand %p579_p5, %p573_p7 }
  0x9b   : > { %583 = shalt.err (!%p580_p12)
}
  0x9c   : > { %307 = dma.vmem_to_hbm [thread:$0]  (%p434_p1), %s305_s25, %s829_s5, %s839_s18, %s282_s27  }
  0x9d PF: > { %s316_s4 = sand.u32 1, %s622_s9   ;;  %p899_p11 = scmp.ne.s32.totalorder %s895_s24, 0 }
  0x9e   : > { %p900_p8 = scmp.ge.s32.totalorder %s642_s14, 2  ;;  %s317_s6 = scalar_lea.sflag [#allocation4], %s316_s4 }
  0xa0   : > { %p447_p9 = pnand %p900_p8, %p899_p11 }
  0xa2   : > { %617 = dma.done.wait (!%p447_p9), %s317_s6, 128  }
  0xa3   : > { %619 = vsyncadd (!%p447_p9), %s317_s6, 4294967168  ;;  %s21_s14 = sadd.s32 1, %s642_s14   ;;  %s901_s9 = smov %s626_s10 }
  0xa4   : > { %p18_p3 = scmp.ge.s32.totalorder %s21_s14, 4   ;;  %s902_s10 = smov %s630_s11 }
  0xa5   : > { %s903_s11 = smov %s719_s23  ;;  %s904_s12 = smov %s638_s13 }
  0xa6   : > { %s905_s13 = smov %s907_s17  ;;  %20 = sbr.rel (!%p18_p3) target bundleno = 8 (0x8), region = 86 }
  0xad   :  { %322 = vsyncpa [#allocation3], 1 }
  0xae   :  { %324 = vsyncpa [#allocation3 + $0x1], 1 }
  0xaf   :  { %325 = vsyncpa [#allocation6], 1 }
  0xb0   :  { %327 = vsyncpa [#allocation6 + $0x1], 1 }
  0xb1   :  { %328 = vsyncpa [#allocation4], 1 }
  0xb2   :  { %330 = vsyncpa [#allocation4 + $0x1], 1 }

</bundles_post_ra>
